<compile_context>
chip_gen: v5e
topology: v5e:2x2
jax: 0.10.0
libtpu: 0.0.40
codegen_flags: <defaults>
</compile_context>

<pallas_src>
import jax
import jax.numpy as jnp
from jax.experimental import pallas as pl
from jax.experimental.pallas import tpu as pltpu


def _fused_linear_selfadd_kernel(x_ref, wb_ref, o_ref):
    # x_ref:  (B, IN)      f32
    # wb_ref: (IN+1, OUT)  f32   rows 0..IN-1 = W^T, row IN = 2*b
    # o_ref:  (B, OUT)     f32   o[i, :] = lin[i, :] + lin[0, :]
    #
    # Algebraic fold: lin[i] + lin[0] = (x[i] + x[0]) @ W + 2*b.
    # IN is tiny (2), so the contraction is unrolled into VPU broadcast FMAs.
    B, IN = x_ref.shape
    OUT = wb_ref.shape[1]

    xs = x_ref[...] + x_ref[0:1, :]                      # (B, IN): x[i] + x[0]

    wb = wb_ref[...]                                     # single vld of params
    acc = jnp.broadcast_to(wb[IN:IN + 1, :], (B, OUT))   # start from 2*b
    for k in range(IN):                                  # static unroll, IN == 2
        acc = acc + xs[:, k:k + 1] * wb[k:k + 1, :]      # broadcast FMA on VPU

    o_ref[...] = acc                                     # one unmasked-ish vst, no reshape


def pack_params(w_t, b):
    """One-time parameter transform: stack [W^T ; 2*b] -> (IN+1, OUT)."""
    out_f = w_t.shape[1]
    return jnp.concatenate([w_t, (2.0 * b).reshape(1, out_f)], axis=0)


def model_forward(x, wb):
    """x: (B, IN) f32, wb: (IN+1, OUT) f32 packed params. Returns (B, 1, OUT)."""
    B, IN = x.shape
    OUT = wb.shape[1]

    out2d = pl.pallas_call(
        _fused_linear_selfadd_kernel,
        out_shape=jax.ShapeDtypeStruct((B, OUT), jnp.float32),
        in_specs=[
            pl.BlockSpec(memory_space=pltpu.MemorySpace.VMEM),
            pl.BlockSpec(memory_space=pltpu.MemorySpace.VMEM),
        ],
        out_specs=pl.BlockSpec(memory_space=pltpu.MemorySpace.VMEM),
        cost_estimate=pl.CostEstimate(
            flops=2 * B * IN * OUT + 2 * B * OUT,
            transcendentals=0,
            bytes_accessed=4 * (B * IN + (IN + 1) * OUT + B * OUT),
        ),
    )(x, wb)

    # Metadata-only unit-dim insert in the wrapper (free in XLA).
    return out2d[:, None, :]


def reference_forward(x, w_t, b):
    # Un-folded reference, mirroring the PyTorch graph exactly (B == 2).
    lin = x @ w_t + b                                    # Linear(2, 4)
    full = lin[:, None, :] + lin[None, :, :]             # unsqueeze(1) + unsqueeze(0)
    x1 = full[0:1, 0:1, :]                               # chunk dim0 then dim1
    x2 = full[1:2, 0:1, :]
    return jnp.concatenate([x1, x2], axis=0)             # (2, 1, 4)


if __name__ == "__main__":
    key = jax.random.PRNGKey(0)
    kx, kw, kb = jax.random.split(key, 3)

    # input: (2, 2) as in the PyTorch module
    x = jax.random.normal(kx, (2, 2), dtype=jnp.float32)

    # nn.Linear(2, 4) parameters, deterministic init (uniform +/- 1/sqrt(in))
    in_f, out_f = 2, 4
    bound = 1.0 / (in_f ** 0.5)
    w = jax.random.uniform(kw, (out_f, in_f), jnp.float32, -bound, bound)  # torch layout
    b = jax.random.uniform(kb, (out_f,), jnp.float32, -bound, bound)
    w_t = w.T                                            # (in_f, out_f)
    wb = pack_params(w_t, b)                             # (in_f + 1, out_f)

    out = model_forward(x, wb)
    jax.block_until_ready(out)

    ref = reference_forward(x, w_t, b)
    assert out.shape == (2, 1, 4), out.shape
    assert jnp.allclose(out, ref, atol=1e-5, rtol=1e-5), (out, ref)

    print("KERNEL_OK")
</pallas_src>

<mosaic_0001>
module attributes {stable_mosaic.version = 11 : i64} {
  func.func @_fused_linear_selfadd_kernel(%arg0: memref<2x2xf32, #tpu.memory_space<vmem>>, %arg1: memref<3x4xf32, #tpu.memory_space<vmem>>, %arg2: memref<2x4xf32, #tpu.memory_space<vmem>>) attributes {dimension_semantics = [], scalar_prefetch = 0 : i64, scratch_operands = 0 : i64, tpu.core_type = #tpu.core_type<tc>} {
    %c0 = arith.constant 0 : index
    %c0_0 = arith.constant 0 : index
    %0 = vector.load %arg0[%c0, %c0_0] : memref<2x2xf32, #tpu.memory_space<vmem>>, vector<2x2xf32>
    %c0_1 = arith.constant 0 : index
    %c0_2 = arith.constant 0 : index
    %1 = vector.load %arg0[%c0_1, %c0_2] : memref<2x2xf32, #tpu.memory_space<vmem>>, vector<1x2xf32>
    %2 = vector.broadcast %1 : vector<1x2xf32> to vector<2x2xf32>
    %3 = arith.addf %0, %2 : vector<2x2xf32>
    %c0_3 = arith.constant 0 : index
    %c0_4 = arith.constant 0 : index
    %4 = vector.load %arg1[%c0_3, %c0_4] : memref<3x4xf32, #tpu.memory_space<vmem>>, vector<3x4xf32>
    %5 = vector.extract_strided_slice %4 {offsets = [2, 0], sizes = [1, 4], strides = [1, 1]} : vector<3x4xf32> to vector<1x4xf32>
    %6 = vector.shape_cast %5 : vector<1x4xf32> to vector<1x4xf32>
    %7 = vector.broadcast %6 : vector<1x4xf32> to vector<2x4xf32>
    %8 = vector.extract_strided_slice %3 {offsets = [0, 0], sizes = [2, 1], strides = [1, 1]} : vector<2x2xf32> to vector<2x1xf32>
    %9 = vector.extract_strided_slice %4 {offsets = [0, 0], sizes = [1, 4], strides = [1, 1]} : vector<3x4xf32> to vector<1x4xf32>
    %10 = vector.broadcast %8 : vector<2x1xf32> to vector<2x4xf32>
    %11 = vector.broadcast %9 : vector<1x4xf32> to vector<2x4xf32>
    %12 = arith.mulf %10, %11 : vector<2x4xf32>
    %13 = arith.addf %7, %12 : vector<2x4xf32>
    %14 = vector.extract_strided_slice %3 {offsets = [0, 1], sizes = [2, 1], strides = [1, 1]} : vector<2x2xf32> to vector<2x1xf32>
    %15 = vector.extract_strided_slice %4 {offsets = [1, 0], sizes = [1, 4], strides = [1, 1]} : vector<3x4xf32> to vector<1x4xf32>
    %16 = vector.broadcast %14 : vector<2x1xf32> to vector<2x4xf32>
    %17 = vector.broadcast %15 : vector<1x4xf32> to vector<2x4xf32>
    %18 = arith.mulf %16, %17 : vector<2x4xf32>
    %19 = arith.addf %13, %18 : vector<2x4xf32>
    %c0_5 = arith.constant 0 : index
    %c0_6 = arith.constant 0 : index
    %20 = vector.load %arg2[%c0_5, %c0_6] : memref<2x4xf32, #tpu.memory_space<vmem>>, vector<2x4xf32>
    tpu.vector_store %arg2[%c0_5, %c0_6], %19 {strides = array<i32>} : memref<2x4xf32, #tpu.memory_space<vmem>>, vector<2x4xf32>,
    return
  }
}

</mosaic_0001>

<bundles_post_ra>
// kernel: tpu_custom_call.1
= control target key start
LH: loop header
LB: loop body
LE: loop exit
PB: predicated region body
PF: predicated region fallthrough
CT: control target
= control target key end

     0   :  { %7 = vsyncpa [#allocation3], 0  ;;  %s196_s0 = inlined_call_operand.hbm [shape: f32[2,2], index: 0, kind: input, shape index: {}]   ;;  %s197_s1 = inlined_call_operand.hbm [shape: f32[3,4], index: 1, kind: input, shape index: {}]   ;;  %s198_s2 = inlined_call_operand.hbm [shape: f32[2,4], index: 2, kind: output, shape index: {}]  }
   0x1   :  { %8 = vsyncpa [#allocation6], 0 }
   0x2   :  { %9 = vsyncpa [#allocation4], 0  ;;  %s15_s11 = sshll.u32 %s196_s0, 4  ;;  %s167_s12 = smov [#allocation2]   ;;  %s16_s11 = int_to_ptr.hbm [resolvable:$true] %s15_s11 }
   0x3   :  { %s17_s13 = sshll.u32 %s167_s12, 4  ;;  %s26_s16 = sshll.u32 %s197_s1, 4  ;;  %s18_s13 = int_to_ptr.vmem [resolvable:$true] %s17_s13  ;;  %s27_s16 = int_to_ptr.hbm [resolvable:$true] %s26_s16 }
   0x4   :  { %20 = dma.hbm_to_vmem [thread:$0]  %s16_s11, 32, %s18_s13, [#allocation3]  }
   0x5   :  { %s168_s17 = smov [#allocation5]  }
   0x6   :  { %s28_s18 = sshll.u32 %s168_s17, 4  ;;  %s29_s18 = int_to_ptr.vmem [resolvable:$true] %s28_s18 }
   0x7   :  { %31 = dma.hbm_to_vmem [thread:$0]  %s27_s16, 64, %s29_s18, [#allocation6]  }
   0x8   :  { %161 = dma.done.wait [#allocation3], 32  }
   0x9   :  { %162 = vsyncadd [#allocation3], 4294967264 }
   0xa   :  { %163 = dma.done.wait [#allocation6], 64  }
   0xb   :  { %164 = vsyncadd [#allocation6], 4294967232  ;;  %v169_v0 = vmov 0   ;;  %v40_v1 = vld [vmem:[#allocation2] sm:$0x3]  ;;  %v170_v4 = vmov 1  }
   0xc   :  { %86 = vset.pattern.permute.xlu0 %v169_v0  ;;  %v88_v2 = vld [vmem:[#allocation2] ss:$0 sm:$0xff]  ;;  %v44_v5 = vld [vmem:[#allocation5] sm:$0x7]  ;;  %s171_s0 = smov [#allocation7]   ;;  %s70_s21 = sshll.u32 %s198_s2, 4  ;;  %s71_s21 = int_to_ptr.hbm [resolvable:$true] %s70_s21 }
   0xd   :  { %v43_v3 = vadd.f32 %v88_v2, %v40_v1  ;;  %v51_v7 = vperm.slane %v44_v5, 0  ;;  %v45_v8 = vperm.slane %v44_v5, 2  ;;  %v58_v10 = vperm.slane %v44_v5, 1  ;;  %s68_s1 = sshll.u32 %s171_s0, 4  ;;  %s69_s1 = int_to_ptr.vmem [resolvable:$true] %s68_s1 }
   0xe   :  { %vm61_vm0 = vcmask 25600  }
   0xf   :  { %48 = vperm.xlu0 %86, %v43_v3  }
  0x17   :  { %87 = vset.pattern.permute.xlu0 %v170_v4 }
  0x18   :  { %55 = vperm.xlu0 %87, %v43_v3  }
  0x81   :  { %v49_v6 = vpop.permute.xlu0 %48 }
  0x82   :  { %v52_v9 = vmul.f32 %v51_v7, %v49_v6 }
  0x84   :  { %v53_v12 = vadd.f32 %v52_v9, %v45_v8 }
  0x8a   :  { %v56_v11 = vpop.permute.xlu0 %55 }
  0x8b   :  { %v59_v13 = vmul.f32 %v58_v10, %v56_v11 }
  0x8d   :  { %v60_v14 = vadd.f32 %v59_v13, %v53_v12 }
  0x8f   :  { %62 = vst.msk [vmem:[#allocation7] sm:$0x3] %vm61_vm0, %v60_v14 }
  0x90   :  { %73 = dma.vmem_to_hbm [thread:$0]  %s69_s1, 32, %s71_s21, [#allocation4]  }
  0x91   :  { %165 = dma.done.wait [#allocation4], 32  }
  0x92   :  { %166 = vsyncadd [#allocation4], 4294967264 }
  0x93   :  { %78 = vsyncpa [#allocation3], 1 }
  0x94   :  { %79 = vsyncpa [#allocation6], 1 }
  0x95   :  { %80 = vsyncpa [#allocation4], 1 }

</bundles_post_ra>
